<compile_context>
chip_gen: v7x
topology: tpu7x:2x2x1
jax: 0.10.0
libtpu: 0.0.40
codegen_flags: <defaults>
</compile_context>

<pallas_src>
import functools
import math

import jax
import jax.numpy as jnp
from jax import lax
from jax.experimental import pallas as pl
from jax.experimental.pallas import tpu as pltpu

EPS = 1e-5


# ---------------------------------------------------------------------------
# VMEM budget / tile selection helpers
# ---------------------------------------------------------------------------
def _vmem_budget_bytes():
    """~3/4 of physical VMEM: ~48 MiB on v7x, ~96 MiB on v5e/v6e."""
    cap = 64 * 1024 * 1024  # conservative default (v7x physical)
    try:
        cap = int(pltpu.get_tpu_info().vmem_capacity_bytes)
    except Exception:
        pass
    return (cap * 3) // 4


def _pick_batch_tile(B, S, D, itemsize, tile_bytes_target):
    """Pick (tb, padded_B) for the main pass.

    tb is a multiple of 8 dividing padded_B (or tb == B for a small whole-batch
    block), sized so one x tile is <= tile_bytes_target.
    """
    row_bytes = S * D * itemsize
    max_tb = max(1, tile_bytes_target // row_bytes)
    # Largest multiple of 8 that divides B and fits the target.
    best = 0
    tb = 8
    while tb <= min(B, max_tb):
        if B % tb == 0:
            best = tb
        tb += 8
    if best:
        return best, B
    # Whole batch fits in one block (also covers B < 8).
    if B * row_bytes <= tile_bytes_target:
        return B, B
    # Pad the batch to a multiple of 8; padded rows are sliced off afterwards
    # and BN statistics are always computed from the UNPADDED x in pass 1.
    pad_b = ((B + 7) // 8) * 8
    best = 8
    tb = 8
    while tb <= min(pad_b, max_tb):
        if pad_b % tb == 0:
            best = tb
        tb += 8
    return best, pad_b


def _pick_stats_tile(B, S, D, itemsize, tile_bytes_target):
    """Largest divisor of B whose x tile fits the target (no mult-of-8 need:
    the leading dim of a (tb, S, D) block is not constrained by (8,128))."""
    row_bytes = S * D * itemsize
    max_tb = max(1, tile_bytes_target // row_bytes)
    tb = 1
    for t in range(1, B + 1):
        if B % t == 0 and t <= max_tb:
            tb = t
    return tb


# ---------------------------------------------------------------------------
# Fused kernel: whole x resident in VMEM (single HBM read of x).
# ---------------------------------------------------------------------------
def _fused_kernel(x_ref, w_ref, bias2_ref, gw_ref, gamma_ref, beta_ref,
                  out_ref, *, inv_count):
    x = x_ref[...].astype(jnp.float32)                            # (B, S, D)

    # Global BatchNorm batch statistics (biased var, training mode).
    s1 = jnp.sum(jnp.sum(x, axis=0), axis=0, keepdims=True)       # (1, D)
    s2 = jnp.sum(jnp.sum(x * x, axis=0), axis=0, keepdims=True)   # (1, D)
    mean = s1 * inv_count
    var = s2 * inv_count - mean * mean
    scale = gamma_ref[...] * lax.rsqrt(var + EPS)                  # (1, D)
    shift = beta_ref[...] - mean * scale                           # (1, D)

    # Fold BN into the score weights / bias; xg is never materialized.
    w = w_ref[...]                                                 # (S, D)
    w_s = w * scale                                                # (S, D)
    c = jnp.sum(w * shift, axis=-1).reshape(1, -1) + bias2_ref[...]  # (1, S)

    scores = jnp.sum(x * w_s[None], axis=-1) + c                   # (B, S)
    a = jnp.tanh(scores)                                           # (B, S)

    # out = scale * sum_s a*x  +  shift * sum_s a  +  sum_s a*gw
    r = jnp.sum(a[..., None] * x, axis=1)                          # (B, D)
    a_sum = jnp.sum(a, axis=-1, keepdims=True)                     # (B, 1)
    g_sum = jnp.sum(a * gw_ref[...], axis=-1, keepdims=True)       # (B, 1)
    out_ref[...] = (scale * r + shift * a_sum + g_sum).astype(out_ref.dtype)


# ---------------------------------------------------------------------------
# Tiled pass 1: global per-channel BN sums / sums-of-squares.
# grid = (groups, tiles_per_group); groups axis is parallel (both v7x TCs),
# tile axis is arbitrary with a resident (1, D) accumulator per group.
# ---------------------------------------------------------------------------
def _stats_kernel(x_ref, sum_ref, sumsq_ref):
    @pl.when(pl.program_id(1) == 0)
    def _init():
        sum_ref[...] = jnp.zeros_like(sum_ref)
        sumsq_ref[...] = jnp.zeros_like(sumsq_ref)

    x = x_ref[...].astype(jnp.float32)                             # (tb, S, D)
    sum_ref[...] += jnp.sum(jnp.sum(x, axis=0), axis=0, keepdims=True)
    sumsq_ref[...] += jnp.sum(jnp.sum(x * x, axis=0), axis=0, keepdims=True)


# ---------------------------------------------------------------------------
# Tiled pass 2: attention from pre-folded per-channel affine (no xg tensor).
# ---------------------------------------------------------------------------
def _main_kernel(x_ref, ws_ref, c_ref, gw_ref, scale_ref, shift_ref, out_ref):
    x = x_ref[...].astype(jnp.float32)                             # (tb, S, D)
    scores = jnp.sum(x * ws_ref[...][None], axis=-1) + c_ref[...]  # (tb, S)
    a = jnp.tanh(scores)
    r = jnp.sum(a[..., None] * x, axis=1)                          # (tb, D)
    a_sum = jnp.sum(a, axis=-1, keepdims=True)                     # (tb, 1)
    g_sum = jnp.sum(a * gw_ref[...], axis=-1, keepdims=True)       # (tb, 1)
    out_ref[...] = (scale_ref[...] * r + shift_ref[...] * a_sum
                    + g_sum).astype(out_ref.dtype)


# ---------------------------------------------------------------------------
# Wrapper
# ---------------------------------------------------------------------------
def gaussian_attention(x, atten_w, atten_bias, gamma, beta, *, sigma=5.0,
                       tile_bytes_target=None, two_pass=None):
    """x: (B, S, D) (f32 or bf16); atten_w: (S, D, 1); atten_bias: (S, 1, 1)."""
    B, S, D = x.shape
    mu = float(S // 2)
    f32 = jnp.float32

    budget = _vmem_budget_bytes()
    vmem_limit = int(budget)
    if tile_bytes_target is None:
        tile_bytes_target = max(4 * 1024 * 1024, budget // 6)

    w2d = atten_w.reshape(S, D).astype(f32)
    bias_row = atten_bias.reshape(1, S).astype(f32)
    gamma2d = gamma.reshape(1, D).astype(f32)
    beta2d = beta.reshape(1, D).astype(f32)

    # Gaussian positional weight: trace-time constant of (S, sigma, mu).
    pos = jnp.arange(S, dtype=f32)
    gw_row = ((1.0 / (math.sqrt(2.0 * math.pi) * sigma))
              * jnp.exp(-0.5 * ((pos - mu) / sigma) ** 2)).reshape(1, S)
    # Fold the gaussian term into the score bias: gw never touches the (S, D)
    # path; it only survives as a (1, S) row for the per-batch output fixup.
    bias2 = bias_row + gw_row * jnp.sum(w2d, axis=-1).reshape(1, S)   # (1, S)

    itemsize = jnp.dtype(x.dtype).itemsize
    x_bytes = B * S * D * itemsize
    inv_count = 1.0 / float(B * S)
    param_bytes = 4 * S * D * 4 + 16 * D * 4 + 16 * S * 4

    if two_pass is None:
        two_pass = (2 * x_bytes + param_bytes) > (budget * 9) // 10

    # ---------------- Fused path: x read from HBM exactly once ------------
    if not two_pass:
        kernel = functools.partial(_fused_kernel, inv_count=inv_count)
        return pl.pallas_call(
            kernel,
            out_shape=jax.ShapeDtypeStruct((B, D), f32),
            compiler_params=pltpu.CompilerParams(
                vmem_limit_bytes=vmem_limit),
        )(x, w2d, bias2, gw_row, gamma2d, beta2d)

    # ---------------- Tiled two-pass path ---------------------------------
    # Pass 1: BN statistics on the UNPADDED x, tiled over batch, with a
    # leading parallel group axis (size 2 when possible -> both v7x TCs).
    tb1 = _pick_stats_tile(B, S, D, itemsize, tile_bytes_target)
    n_tiles1 = B // tb1
    num_groups = 2 if (n_tiles1 >= 2 and n_tiles1 % 2 == 0) else 1
    tiles_per_group = n_tiles1 // num_groups

    def x_stats_map(g, i):
        return (g * tiles_per_group + i, 0, 0)

    sum_p, sumsq_p = pl.pallas_call(
        _stats_kernel,
        out_shape=(jax.ShapeDtypeStruct((num_groups, D), f32),
                   jax.ShapeDtypeStruct((num_groups, D), f32)),
        grid=(num_groups, tiles_per_group),
        in_specs=[pl.BlockSpec((tb1, S, D), x_stats_map)],
        out_specs=(pl.BlockSpec((1, D), lambda g, i: (g, 0)),
                   pl.BlockSpec((1, D), lambda g, i: (g, 0))),
        compiler_params=pltpu.CompilerParams(
            dimension_semantics=("parallel", "arbitrary"),
            vmem_limit_bytes=vmem_limit),
    )(x)

    # Tiny wrapper-side XLA ops: reduce partial sums, fold BN into an affine,
    # pre-scale the attention weights and fold shift into the score bias so
    # pass 2 does no per-step stats math.
    s1 = jnp.sum(sum_p, axis=0, keepdims=True)                     # (1, D)
    s2 = jnp.sum(sumsq_p, axis=0, keepdims=True)                   # (1, D)
    mean = s1 * inv_count
    var = s2 * inv_count - mean * mean                             # biased var
    scale = gamma2d * lax.rsqrt(var + EPS)                         # (1, D)
    shift = beta2d - mean * scale                                  # (1, D)
    w_s = w2d * scale                                              # (S, D)
    c = jnp.sum(w2d * shift, axis=-1).reshape(1, S) + bias2        # (1, S)

    # Pass 2: main attention pass, parallel over batch tiles.
    tb, pad_b = _pick_batch_tile(B, S, D, itemsize, tile_bytes_target)
    x2 = x if pad_b == B else jnp.pad(x, ((0, pad_b - B), (0, 0), (0, 0)))
    n_tiles = pad_b // tb

    def resident(shape):
        # Constant index_map -> stays VMEM-resident, not re-DMA'd per step.
        return pl.BlockSpec(shape, lambda i, _s=shape: (0,) * len(_s))

    out = pl.pallas_call(
        _main_kernel,
        out_shape=jax.ShapeDtypeStruct((pad_b, D), f32),
        grid=(n_tiles,),
        in_specs=[
            pl.BlockSpec((tb, S, D), lambda i: (i, 0, 0)),  # x tile (native dtype)
            resident((S, D)),                               # scale * atten_w
            resident((1, S)),                               # folded score bias
            resident((1, S)),                               # gaussian row
            resident((1, D)),                               # scale
            resident((1, D)),                               # shift
        ],
        out_specs=pl.BlockSpec((tb, D), lambda i: (i, 0)),
        compiler_params=pltpu.CompilerParams(
            dimension_semantics=("parallel",),
            vmem_limit_bytes=vmem_limit),
    )(x2, w_s, c, gw_row, scale, shift)
    return out if pad_b == B else out[:B]


# ---------------------------------------------------------------------------
# Pure-JAX reference mirroring the PyTorch forward (training-mode BN).
# ---------------------------------------------------------------------------
def gaussian_attention_ref(x, atten_w, atten_bias, gamma, beta, *, sigma=5.0):
    B, S, D = x.shape
    mu = float(S // 2)
    x = x.astype(jnp.float32)
    mean = jnp.mean(x, axis=(0, 1), keepdims=True)
    var = jnp.mean((x - mean) ** 2, axis=(0, 1), keepdims=True)
    xn = (x - mean) / jnp.sqrt(var + EPS) * gamma.reshape(1, 1, D) \
        + beta.reshape(1, 1, D)
    pos = jnp.arange(S, dtype=jnp.float32)[:, None]
    gw = (1.0 / (math.sqrt(2.0 * math.pi) * sigma)) * \
        jnp.exp(-0.5 * ((pos - mu) / sigma) ** 2)
    xg = xn + jnp.broadcast_to(gw, (S, D))[None]
    scores = jnp.einsum("bsd,sd->bs", xg, atten_w.reshape(S, D)) \
        + atten_bias.reshape(1, S)
    atten = jnp.tanh(scores)
    return jnp.einsum("bs,bsd->bd", atten, xg)


if __name__ == "__main__":
    # Small but TPU-friendly shapes: D a multiple of 128 -> lane-dense tiles
    # and unmasked output stores.
    B, S, D = 16, 8, 128      # batch, seq_len, input_size

    key = jax.random.PRNGKey(0)
    kx, kw = jax.random.split(key)
    x = jax.random.normal(kx, (B, S, D), dtype=jnp.float32)

    # Parameter init mirroring the module's __init__ (deterministic):
    stdv = math.sqrt(6.0 / (D + 1))                        # glorot over (D, 1)
    atten_w = jax.random.uniform(kw, (S, D, 1), dtype=jnp.float32,
                                 minval=-stdv, maxval=stdv)
    atten_bias = jnp.zeros((S, 1, 1), dtype=jnp.float32)   # .fill_(0)
    gamma = jnp.ones((D,), dtype=jnp.float32)              # BatchNorm1d weight
    beta = jnp.zeros((D,), dtype=jnp.float32)              # BatchNorm1d bias

    ref = gaussian_attention_ref(x, atten_w, atten_bias, gamma, beta, sigma=5.0)

    # 1) Fused path (default for small x): x read from HBM once.
    out = jax.block_until_ready(
        gaussian_attention(x, atten_w, atten_bias, gamma, beta, sigma=5.0))
    assert out.shape == (B, D)
    assert jnp.allclose(out, ref, atol=1e-3, rtol=1e-3)

    # 2) Forced tiled two-pass path with a tiny tile budget: exercises the
    #    2-group parallel stats pass + resident accumulators + tiled main pass.
    out_t = jax.block_until_ready(
        gaussian_attention(x, atten_w, atten_bias, gamma, beta, sigma=5.0,
                           tile_bytes_target=32 * 1024, two_pass=True))
    assert jnp.allclose(out_t, ref, atol=1e-3, rtol=1e-3)

    # 3) bf16 input: DMA'd as bf16 (half HBM bytes), cast to f32 in-kernel.
    xb = x.astype(jnp.bfloat16)
    ref_b = gaussian_attention_ref(xb.astype(jnp.float32), atten_w, atten_bias,
                                   gamma, beta, sigma=5.0)
    out_b = jax.block_until_ready(
        gaussian_attention(xb, atten_w, atten_bias, gamma, beta, sigma=5.0))
    assert jnp.allclose(out_b, ref_b, atol=2e-3, rtol=2e-3)

    # 4) Non-multiple-of-8 batch on the tiled path: batch is padded for the
    #    main pass (sliced back) while BN stats use the unpadded x.
    B2 = 12
    x3 = jax.random.normal(jax.random.PRNGKey(1), (B2, S, D), dtype=jnp.float32)
    ref3 = gaussian_attention_ref(x3, atten_w, atten_bias, gamma, beta, sigma=5.0)
    out3 = jax.block_until_ready(
        gaussian_attention(x3, atten_w, atten_bias, gamma, beta, sigma=5.0,
                           tile_bytes_target=32 * 1024, two_pass=True))
    assert out3.shape == (B2, D)
    assert jnp.allclose(out3, ref3, atol=1e-3, rtol=1e-3)

    # 5) Toy single-block case (B=2, fused path).
    x4 = jax.random.normal(jax.random.PRNGKey(2), (2, S, D), dtype=jnp.float32)
    out4 = jax.block_until_ready(
        gaussian_attention(x4, atten_w, atten_bias, gamma, beta, sigma=5.0))
    ref4 = gaussian_attention_ref(x4, atten_w, atten_bias, gamma, beta, sigma=5.0)
    assert jnp.allclose(out4, ref4, atol=1e-3, rtol=1e-3)

    print("KERNEL_OK")
</pallas_src>

<mosaic_0001>
module attributes {stable_mosaic.version = 11 : i64} {
  func.func @_fused_kernel(%arg0: memref<16x8x128xf32, #tpu.memory_space<vmem>>, %arg1: memref<8x128xf32, #tpu.memory_space<vmem>>, %arg2: memref<1x8xf32, #tpu.memory_space<vmem>>, %arg3: memref<1x8xf32, #tpu.memory_space<vmem>>, %arg4: memref<1x128xf32, #tpu.memory_space<vmem>>, %arg5: memref<1x128xf32, #tpu.memory_space<vmem>>, %arg6: memref<16x128xf32, #tpu.memory_space<vmem>>) attributes {dimension_semantics = [], scalar_prefetch = 0 : i64, scratch_operands = 0 : i64, tpu.core_type = #tpu.core_type<tc>} {
    %c0 = arith.constant 0 : index
    %c0_0 = arith.constant 0 : index
    %c0_1 = arith.constant 0 : index
    %0 = vector.load %arg0[%c0, %c0_0, %c0_1] : memref<16x8x128xf32, #tpu.memory_space<vmem>>, vector<16x8x128xf32>
    %cst = arith.constant dense<0.000000e+00> : vector<8x128xf32>
    %1 = vector.multi_reduction <add>, %0, %cst [0] : vector<16x8x128xf32> to vector<8x128xf32>
    %cst_2 = arith.constant dense<0.000000e+00> : vector<128xf32>
    %2 = vector.multi_reduction <add>, %1, %cst_2 [0] : vector<8x128xf32> to vector<128xf32>
    %3 = vector.shape_cast %2 : vector<128xf32> to vector<1x128xf32>
    %4 = arith.mulf %0, %0 : vector<16x8x128xf32>
    %cst_3 = arith.constant dense<0.000000e+00> : vector<8x128xf32>
    %5 = vector.multi_reduction <add>, %4, %cst_3 [0] : vector<16x8x128xf32> to vector<8x128xf32>
    %cst_4 = arith.constant dense<0.000000e+00> : vector<128xf32>
    %6 = vector.multi_reduction <add>, %5, %cst_4 [0] : vector<8x128xf32> to vector<128xf32>
    %7 = vector.shape_cast %6 : vector<128xf32> to vector<1x128xf32>
    %cst_5 = arith.constant 7.812500e-03 : f32
    %8 = vector.broadcast %cst_5 : f32 to vector<1x128xf32>
    %9 = arith.mulf %3, %8 : vector<1x128xf32>
    %cst_6 = arith.constant 7.812500e-03 : f32
    %10 = vector.broadcast %cst_6 : f32 to vector<1x128xf32>
    %11 = arith.mulf %7, %10 : vector<1x128xf32>
    %12 = arith.mulf %9, %9 : vector<1x128xf32>
    %13 = arith.subf %11, %12 : vector<1x128xf32>
    %c0_7 = arith.constant 0 : index
    %c0_8 = arith.constant 0 : index
    %14 = vector.load %arg4[%c0_7, %c0_8] : memref<1x128xf32, #tpu.memory_space<vmem>>, vector<1x128xf32>
    %cst_9 = arith.constant 9.99999974E-6 : f32
    %15 = vector.broadcast %cst_9 : f32 to vector<1x128xf32>
    %16 = arith.addf %13, %15 : vector<1x128xf32>
    %17 = math.rsqrt %16 : vector<1x128xf32>
    %18 = arith.mulf %14, %17 : vector<1x128xf32>
    %c0_10 = arith.constant 0 : index
    %c0_11 = arith.constant 0 : index
    %19 = vector.load %arg5[%c0_10, %c0_11] : memref<1x128xf32, #tpu.memory_space<vmem>>, vector<1x128xf32>
    %20 = arith.mulf %9, %18 : vector<1x128xf32>
    %21 = arith.subf %19, %20 : vector<1x128xf32>
    %c0_12 = arith.constant 0 : index
    %c0_13 = arith.constant 0 : index
    %22 = vector.load %arg1[%c0_12, %c0_13] : memref<8x128xf32, #tpu.memory_space<vmem>>, vector<8x128xf32>
    %23 = vector.broadcast %18 : vector<1x128xf32> to vector<8x128xf32>
    %24 = arith.mulf %22, %23 : vector<8x128xf32>
    %25 = vector.broadcast %21 : vector<1x128xf32> to vector<8x128xf32>
    %26 = arith.mulf %22, %25 : vector<8x128xf32>
    %cst_14 = arith.constant dense<0.000000e+00> : vector<8xf32>
    %27 = vector.multi_reduction <add>, %26, %cst_14 [1] : vector<8x128xf32> to vector<8xf32>
    %28 = vector.shape_cast %27 : vector<8xf32> to vector<1x8xf32>
    %c0_15 = arith.constant 0 : index
    %c0_16 = arith.constant 0 : index
    %29 = vector.load %arg2[%c0_15, %c0_16] : memref<1x8xf32, #tpu.memory_space<vmem>>, vector<1x8xf32>
    %30 = arith.addf %28, %29 : vector<1x8xf32>
    %31 = vector.shape_cast %24 : vector<8x128xf32> to vector<1x8x128xf32>
    %32 = vector.broadcast %31 : vector<1x8x128xf32> to vector<16x8x128xf32>
    %33 = arith.mulf %0, %32 : vector<16x8x128xf32>
    %cst_17 = arith.constant dense<0.000000e+00> : vector<16x8xf32>
    %34 = vector.multi_reduction <add>, %33, %cst_17 [2] : vector<16x8x128xf32> to vector<16x8xf32>
    %35 = vector.broadcast %30 : vector<1x8xf32> to vector<16x8xf32>
    %36 = arith.addf %34, %35 : vector<16x8xf32>
    %37 = math.tanh %36 : vector<16x8xf32>
    %38 = vector.shape_cast %37 : vector<16x8xf32> to vector<16x8x1xf32>
    %39 = vector.broadcast %38 : vector<16x8x1xf32> to vector<16x8x128xf32>
    %40 = arith.mulf %39, %0 : vector<16x8x128xf32>
    %cst_18 = arith.constant dense<0.000000e+00> : vector<16x128xf32>
    %41 = vector.multi_reduction <add>, %40, %cst_18 [1] : vector<16x8x128xf32> to vector<16x128xf32>
    %cst_19 = arith.constant dense<0.000000e+00> : vector<16xf32>
    %42 = vector.multi_reduction <add>, %37, %cst_19 [1] : vector<16x8xf32> to vector<16xf32>
    %43 = vector.shape_cast %42 : vector<16xf32> to vector<16x1xf32>
    %c0_20 = arith.constant 0 : index
    %c0_21 = arith.constant 0 : index
    %44 = vector.load %arg3[%c0_20, %c0_21] : memref<1x8xf32, #tpu.memory_space<vmem>>, vector<1x8xf32>
    %45 = vector.broadcast %44 : vector<1x8xf32> to vector<16x8xf32>
    %46 = arith.mulf %37, %45 : vector<16x8xf32>
    %cst_22 = arith.constant dense<0.000000e+00> : vector<16xf32>
    %47 = vector.multi_reduction <add>, %46, %cst_22 [1] : vector<16x8xf32> to vector<16xf32>
    %48 = vector.shape_cast %47 : vector<16xf32> to vector<16x1xf32>
    %49 = vector.broadcast %18 : vector<1x128xf32> to vector<16x128xf32>
    %50 = arith.mulf %49, %41 : vector<16x128xf32>
    %51 = vector.broadcast %21 : vector<1x128xf32> to vector<16x128xf32>
    %52 = vector.broadcast %43 : vector<16x1xf32> to vector<16x128xf32>
    %53 = arith.mulf %51, %52 : vector<16x128xf32>
    %54 = arith.addf %50, %53 : vector<16x128xf32>
    %55 = vector.broadcast %48 : vector<16x1xf32> to vector<16x128xf32>
    %56 = arith.addf %54, %55 : vector<16x128xf32>
    %c0_23 = arith.constant 0 : index
    %c0_24 = arith.constant 0 : index
    %57 = vector.load %arg6[%c0_23, %c0_24] : memref<16x128xf32, #tpu.memory_space<vmem>>, vector<16x128xf32>
    tpu.vector_store %arg6[%c0_23, %c0_24], %56 {strides = array<i32>} : memref<16x128xf32, #tpu.memory_space<vmem>>, vector<16x128xf32>,
    return
  }
}

</mosaic_0001>

<bundles_post_ra>
// kernel: tpu_custom_call.1
= control target key start
LH: loop header
LB: loop body
LE: loop exit
PB: predicated region body
PF: predicated region fallthrough
CT: control target
= control target key end

     0   :  { %11 = vsyncpa [#allocation3], 0  ;;  %s1239_s0 = inlined_call_operand.hbm [shape: f32[16,8,128], index: 0, kind: input, shape index: {}]   ;;  %s1240_s1 = inlined_call_operand.hbm [shape: f32[8,128], index: 1, kind: input, shape index: {}]   ;;  %s1241_s2 = inlined_call_operand.vmem [shape: f32[1,8], index: 2, kind: input, shape index: {}]   ;;  %s1242_s3 = inlined_call_operand.vmem [shape: f32[1,8], index: 3, kind: input, shape index: {}]   ;;  %s1243_s4 = inlined_call_operand.vmem [shape: f32[1,128], index: 4, kind: input, shape index: {}]   ;;  %s1244_s5 = inlined_call_operand.vmem [shape: f32[1,128], index: 5, kind: input, shape index: {}]   ;;  %s1245_s6 = inlined_call_operand.hbm [shape: f32[16,128], index: 6, kind: output, shape index: {}]  }
   0x1   :  { %12 = vsyncpa [#allocation6], 0 }
   0x2   :  { %13 = vsyncpa [#allocation4], 0  ;;  %s883_s21 = smov [#allocation2]   ;;  %s811_s25 = scalar_lea.hbm %s1239_s0, 2048 }
   0x3   :  { %s19_s22 = sshll.u32 %s883_s21, 4  ;;  %p812_p0 = scmp.ne.s32.totalorder %s1239_s0, %s811_s25  ;;  %s20_s22 = int_to_ptr.vmem [resolvable:$true] %s19_s22 }
   0x4   :  { %p815_p1 = scmp.lt.u32.totalorder %s811_s25, %s1239_s0 }
   0x6   :  { %p817_p2 = pnand %p815_p1, %p812_p0 }
   0x8   :  { %820 = shalt.err (!%p817_p2)
}
   0x9   :  { %s821_s30 = scalar_lea.vmem %s20_s22, 2048  ;;  %p826_p4 = scmp.lt.s32.totalorder %s20_s22, %s20_s22 }
   0xa   :  { %p822_p3 = scmp.ne.s32.totalorder %s20_s22, %s821_s30  ;;  %p827_p5 = scmp.lt.s32.totalorder %s821_s30, %s821_s30 }
   0xc   :  { %p828_p6 = por %p827_p5, %p826_p4 }
   0xe   :  { %p829_p7 = pnand %p828_p6, %p822_p3 }
  0x10   :  { %832 = shalt.err (!%p829_p7)
}
  0x11   :  { %s884_s7 = smov 128   ;;  %s885_s8 = smov 8  }
  0x12   :  { %25 = dma.hbm_to_vmem [thread:$0]  %s1239_s0, 2048, %s20_s22, [#allocation3], %s884_s7, %s884_s7, %s885_s8  }
  0x13   :  { %s886_s11 = smov [#allocation5]   ;;  %s833_s15 = scalar_lea.hbm %s1240_s1, 128 }
  0x14   :  { %s32_s12 = sshll.u32 %s886_s11, 4  ;;  %p834_p8 = scmp.ne.s32.totalorder %s1240_s1, %s833_s15  ;;  %s33_s12 = int_to_ptr.vmem [resolvable:$true] %s32_s12 }
  0x15   :  { %p837_p9 = scmp.lt.u32.totalorder %s833_s15, %s1240_s1 }
  0x17   :  { %p839_p10 = pnand %p837_p9, %p834_p8 }
  0x19   :  { %842 = shalt.err (!%p839_p10)
}
  0x1a   :  { %s843_s20 = scalar_lea.vmem %s33_s12, 128  ;;  %p848_p12 = scmp.lt.s32.totalorder %s33_s12, %s33_s12 }
  0x1b   :  { %p844_p11 = scmp.ne.s32.totalorder %s33_s12, %s843_s20  ;;  %p849_p13 = scmp.lt.s32.totalorder %s843_s20, %s843_s20 }
  0x1d   :  { %p850_p0 = por %p849_p13, %p848_p12 }
  0x1f   :  { %p851_p1 = pnand %p850_p0, %p844_p11 }
  0x21   :  { %854 = shalt.err (!%p851_p1)
}
  0x22   :  { %35 = dma.hbm_to_vmem [thread:$0]  %s1240_s1, 128, %s33_s12, [#allocation6]  }
  0x23   :  { %877 = dma.done.wait [#allocation3], 2048  }
  0x24   :  { %878 = vsyncadd [#allocation3], 4294965248 }
  0x25   :  { %879 = dma.done.wait [#allocation6], 128  }
  0x26   :  { %880 = vsyncadd [#allocation6], 4294967168  ;;  %v137_v0 = vlaneseq  ;;  %v767_v4 = vld [vmem:[%s1241_s2] ss:$0 sm:$0xff]  ;;  %v961_v6 = vld [vmem:[#allocation2 + $0x8] sm:$0xff]  ;;  %vm501_vm0 = vcmask 1041409  }
  0x27   :  { %v959_v5 = vld [vmem:[#allocation2] sm:$0xff]  ;;  %159 = vbcast.lane.b32.xlu0 %v767_v4, 256  ;;  %v963_v7 = vld [vmem:[#allocation2 + $0x10] sm:$0xff]  ;;  %v965_v8 = vld [vmem:[#allocation2 + $0x18] sm:$0xff]  ;;  %v88_v11 = vmul.f32 %v961_v6, %v961_v6  ;;  %vm503_vm1 = vcmask 1042434   ;;  %vm505_vm2 = vcmask 1043459  }
  0x28   :  { %v951_v1 = vshrl.u32 %v137_v0, 7  ;;  %v436_v2 = vand.u32 127, %v137_v0  ;;  %v66_v9 = vadd.f32 %v961_v6, %v959_v5  ;;  %v87_v10 = vmul.f32 %v959_v5, %v959_v5  ;;  %v975_v13 = vld [vmem:[#allocation2 + $0x20] sm:$0xff]  ;;  %v980_v17 = vld [vmem:[#allocation2 + $0x28] sm:$0xff]  ;;  %v985_v21 = vld [vmem:[#allocation2 + $0x30] sm:$0xff] }
  0x29   :  { %v89_v12 = vmul.f32 %v963_v7, %v963_v7  ;;  %v90_v15 = vmul.f32 %v965_v8, %v965_v8  ;;  %v91_v19 = vmul.f32 %v975_v13, %v975_v13  ;;  %v92_v23 = vmul.f32 %v980_v17, %v980_v17  ;;  %v990_v25 = vld [vmem:[#allocation2 + $0x38] sm:$0xff]  ;;  %v995_v29 = vld [vmem:[#allocation2 + $0x40] sm:$0xff]  ;;  %v1000_v33 = vld [vmem:[#allocation2 + $0x48] sm:$0xff] }
  0x2a   :  { %v954_v3 = vsub.s32 %v436_v2, %v951_v1  ;;  %v67_v14 = vadd.f32 %v66_v9, %v963_v7  ;;  %v103_v16 = vadd.f32 %v88_v11, %v87_v10  ;;  %v93_v27 = vmul.f32 %v985_v21, %v985_v21  ;;  %v1005_v37 = vld [vmem:[#allocation2 + $0x50] sm:$0xff]  ;;  %v1010_v41 = vld [vmem:[#allocation2 + $0x58] sm:$0xff]  ;;  %v1015_v45 = vld [vmem:[#allocation2 + $0x60] sm:$0xff] }
  0x2b   :  { %v94_v31 = vmul.f32 %v990_v25, %v990_v25  ;;  %v95_v35 = vmul.f32 %v995_v29, %v995_v29  ;;  %v96_v39 = vmul.f32 %v1000_v33, %v1000_v33  ;;  %v97_v43 = vmul.f32 %v1005_v37, %v1005_v37  ;;  %v1020_v49 = vld [vmem:[#allocation2 + $0x68] sm:$0xff]  ;;  %v1025_v53 = vld [vmem:[#allocation2 + $0x70] sm:$0xff]  ;;  %v1030_v57 = vld [vmem:[#allocation2 + $0x78] sm:$0xff] }
  0x2c   :  { %v68_v18 = vadd.f32 %v67_v14, %v965_v8  ;;  %v104_v20 = vadd.f32 %v103_v16, %v89_v12  ;;  %v98_v47 = vmul.f32 %v1010_v41, %v1010_v41  ;;  %v99_v51 = vmul.f32 %v1015_v45, %v1015_v45 }
  0x2d   :  { %v100_v55 = vmul.f32 %v1020_v49, %v1020_v49  ;;  %v101_v59 = vmul.f32 %v1025_v53, %v1025_v53  ;;  %v102_v62 = vmul.f32 %v1030_v57, %v1030_v57  ;;  %vm507_vm3 = vcmask 1044484  }
  0x2e   :  { %v69_v22 = vadd.f32 %v68_v18, %v975_v13  ;;  %v105_v24 = vadd.f32 %v104_v20, %v90_v15  ;;  %vm509_vm4 = vcmask 1045509   ;;  %vm513_vm5 = vcmask 1047559  }
  0x2f   :  { %vm511_vm6 = vcmask 1046534   ;;  %vm524_vm7 = vcmask 64512  }
  0x30   :  { %v70_v26 = vadd.f32 %v69_v22, %v980_v17  ;;  %v106_v28 = vadd.f32 %v105_v24, %v91_v19 }
  0x32   :  { %v71_v30 = vadd.f32 %v70_v26, %v985_v21  ;;  %v107_v32 = vadd.f32 %v106_v28, %v92_v23 }
  0x34   :  { %v72_v34 = vadd.f32 %v71_v30, %v990_v25  ;;  %v108_v36 = vadd.f32 %v107_v32, %v93_v27  ;;  %v139_v32 = vsub.s32 0, %v951_v1 }
  0x36   :  { %v73_v38 = vadd.f32 %v72_v34, %v995_v29  ;;  %v109_v40 = vadd.f32 %v108_v36, %v94_v31  ;;  %v128_v31 = vld [vmem:[%s1243_s4] sm:$0x1] }
  0x37   :  { %v135_v36 = vld [vmem:[#allocation5] sm:$0xff] }
  0x38   :  { %v74_v42 = vadd.f32 %v73_v38, %v1000_v33  ;;  %v110_v44 = vadd.f32 %v109_v40, %v95_v35  ;;  %v132_v38 = vld [vmem:[%s1244_s5] sm:$0x1] }
  0x3a   :  { %v75_v46 = vadd.f32 %v74_v42, %v1005_v37  ;;  %v111_v48 = vadd.f32 %v110_v44, %v96_v39 }
  0x3c   :  { %v76_v50 = vadd.f32 %v75_v46, %v1010_v41  ;;  %v112_v52 = vadd.f32 %v111_v48, %v97_v43 }
  0x3e   :  { %v77_v54 = vadd.f32 %v76_v50, %v1015_v45  ;;  %v113_v56 = vadd.f32 %v112_v52, %v98_v47 }
  0x40   :  { %v78_v58 = vadd.f32 %v77_v54, %v1020_v49  ;;  %v114_v60 = vadd.f32 %v113_v56, %v99_v51  ;;  %v768_v56 = vld [vmem:[%s1242_s3] ss:$0 sm:$0xff]  ;;  %s888_s3 = smov [#allocation7]  }
  0x41   :  { %s754_s26 = sshll.u32 %s888_s3, 4  ;;  %s755_s26 = int_to_ptr.vmem [resolvable:$true] %s754_s26 }
  0x42   :  { %v79_v61 = vadd.f32 %v78_v58, %v1025_v53  ;;  %v115_v63 = vadd.f32 %v114_v60, %v100_v55  ;;  %s855_s27 = scalar_lea.vmem %s755_s26, 256  ;;  %p860_p3 = scmp.lt.s32.totalorder %s755_s26, %s755_s26 }
  0x43   :  { %p856_p2 = scmp.ne.s32.totalorder %s755_s26, %s855_s27  ;;  %p861_p4 = scmp.lt.s32.totalorder %s855_s27, %s855_s27 }
  0x44   :  { %v80_v0 = vadd.f32 %v79_v61, %v1030_v57  ;;  %v116_v2 = vadd.f32 %v115_v63, %v101_v59  ;;  %v887_v61 = vmov 0  }
  0x45   :  { %776 = vset.pattern.permute.xlu0 %v887_v61  ;;  %775 = vset.pattern.permute.xlu1 %v887_v61  ;;  %p862_p5 = por %p861_p4, %p860_p3 }
  0x46   :  { %v81_v4 = vrot.slane %v80_v0, 4  ;;  %v117_v9 = vadd.f32 %v116_v2, %v102_v62 }
  0x47   :  { %p863_p6 = pnand %p862_p5, %p856_p2 }
  0x48   :  { %v82_v10 = vadd.f32 %v81_v4, %v80_v0  ;;  %v118_v11 = vrot.slane %v117_v9, 4 }
  0x4a   :  { %v83_v12 = vrot.slane %v82_v10, 2  ;;  %v119_v14 = vadd.f32 %v118_v11, %v117_v9 }
  0x4c   :  { %v84_v15 = vadd.f32 %v83_v12, %v82_v10  ;;  %v120_v16 = vrot.slane %v119_v14, 2 }
  0x4e   :  { %v85_v18 = vrot.slane %v84_v15, 1  ;;  %v121_v19 = vadd.f32 %v120_v16, %v119_v14 }
  0x50   :  { %v86_v20 = vadd.f32 %v85_v18, %v84_v15  ;;  %v122_v22 = vrot.slane %v121_v19, 1 }
  0x52   :  { %v124_v23 = vmul.f32 0.0078125, %v86_v20  ;;  %v123_v24 = vadd.f32 %v122_v22, %v121_v19 }
  0x54   :  { %v126_v26 = vmul.f32 %v124_v23, %v124_v23  ;;  %v125_v27 = vmul.f32 0.0078125, %v123_v24 }
  0x56   :  { %v127_v28 = vsub.f32 %v125_v27, %v126_v26 }
  0x58   :  { %v129_v30 = vadd.f32 1e-05, %v127_v28 }
  0x5a   :  { %777 = vrsqrt.f32 %v129_v30 }
  0x64   :  { %v778_v34 = vpop.eup %777 }
  0x65   :  { %v131_v35 = vmul.f32 %v778_v34, %v128_v31 }
  0x67   :  { %v1046_v39 = vrot.slane %v131_v35, %v139_v32  ;;  %v133_v40 = vmul.f32 %v131_v35, %v124_v23 }
  0x69   :  { %v142_v42 = vmul.f32 %v1046_v39, %v135_v36  ;;  %v134_v43 = vsub.f32 %v132_v38, %v133_v40 }
  0x6b   :  { %v174_v44 = vmul.f32 %v142_v42, %v1010_v41  ;;  %v163_v46 = vmul.f32 %v142_v42, %v959_v5  ;;  %v1051_v47 = vrot.slane %v134_v43, %v139_v32  ;;  %v164_v1 = vmul.f32 %v142_v42, %v961_v6 }
  0x6c   :  { %v171_v50 = vmul.f32 %v142_v42, %v995_v29  ;;  %v172_v51 = vmul.f32 %v142_v42, %v1000_v33  ;;  %v165_v52 = vmul.f32 %v142_v42, %v963_v7  ;;  %v173_v54 = vmul.f32 %v142_v42, %v1005_v37 }
  0x6d   :  { %201 = vadd.xlane.f32.xlu0 %v174_v44  ;;  %179 = vadd.xlane.f32.xlu1 %v163_v46  ;;  %v149_v48 = vmul.f32 %v1051_v47, %v135_v36  ;;  %v166_v55 = vmul.f32 %v142_v42, %v965_v8  ;;  %v167_v58 = vmul.f32 %v142_v42, %v975_v13 }
  0x6e   :  { %v175_v59 = vmul.f32 %v142_v42, %v1015_v45  ;;  %v168_v60 = vmul.f32 %v142_v42, %v980_v17  ;;  %v176_v62 = vmul.f32 %v142_v42, %v1020_v49  ;;  %v169_v63 = vmul.f32 %v142_v42, %v985_v21 }
  0x6f   :  { %v177_v0 = vmul.f32 %v142_v42, %v1025_v53  ;;  %v170_v2 = vmul.f32 %v142_v42, %v990_v25  ;;  %v178_v4 = vmul.f32 %v142_v42, %v1030_v57 }
  0x71   :  { %181 = vadd.xlane.f32.xlu1 %v164_v1  ;;  %150 = vadd.xlane.f32.xlu0 %v149_v48 }
  0x75   :  { %195 = vadd.xlane.f32.xlu1 %v171_v50 }
  0x79   :  { %197 = vadd.xlane.f32.xlu1 %v172_v51 }
  0x7d   :  { %183 = vadd.xlane.f32.xlu1 %v165_v52 }
  0x81   :  { %199 = vadd.xlane.f32.xlu1 %v173_v54 }
  0x85   :  { %185 = vadd.xlane.f32.xlu1 %v166_v55 }
  0x87   :  { %538 = vbcast.lane.b32.xlu0 %v768_v56, 256 }
  0x89   :  { %187 = vadd.xlane.f32.xlu1 %v167_v58 }
  0x8d   :  { %203 = vadd.xlane.f32.xlu1 %v175_v59 }
  0x91   :  { %189 = vadd.xlane.f32.xlu1 %v168_v60 }
  0x95   :  { %205 = vadd.xlane.f32.xlu1 %v176_v62 }
  0x99   :  { %191 = vadd.xlane.f32.xlu1 %v169_v63  ;;  %v160_v9 = vpop.permute.xlu0 %159 }
  0x9d   :  { %207 = vadd.xlane.f32.xlu1 %v177_v0 }
  0xa1   :  { %193 = vadd.xlane.f32.xlu1 %v170_v2 }
  0xa5   :  { %209 = vadd.xlane.f32.xlu1 %v178_v4 }
  0xfa   :  { %v202_v10 = vpop.xlane.xlu0 %201  ;;  %v180_v11 = vpop.xlane.xlu1 %179 }
  0xfe   :  { %v182_v12 = vpop.xlane.xlu1 %181  ;;  %v151_v14 = vpop.xlane.xlu0 %150 }
  0xff   :  { %v162_v15 = vadd.f32 %v160_v9, %v151_v14 }
 0x101   :  { %v211_v16 = vadd.f32 %v180_v11, %v162_v15  ;;  %v212_v19 = vadd.f32 %v182_v12, %v162_v15  ;;  %v222_v55 = vadd.f32 %v202_v10, %v162_v15 }
 0x102   :  { %v196_v18 = vpop.xlane.xlu1 %195 }
 0x103   :  { %779 = vtanh.f32 %v211_v16  ;;  %v219_v42 = vadd.f32 %v196_v18, %v162_v15  ;;  %v539_v16 = vpop.permute.xlu0 %538 }
 0x104   :  { %781 = vtanh.f32 %v212_v19 }
 0x106   :  { %v198_v20 = vpop.xlane.xlu1 %197 }
 0x107   :  { %v220_v50 = vadd.f32 %v198_v20, %v162_v15 }
 0x10a   :  { %v184_v22 = vpop.xlane.xlu1 %183 }
 0x10b   :  { %v213_v23 = vadd.f32 %v184_v22, %v162_v15 }
 0x10d   :  { %v1071_v24 = vpop.eup %779  ;;  %783 = vtanh.f32 %v213_v23 }
 0x10e   :  { %v200_v26 = vpop.xlane.xlu1 %199  ;;  %245 = vperm.xlu1 %775, %v1071_v24   ;;  %v1074_v27 = vpop.eup %781  ;;  %v541_v18 = vmul.f32 %v1071_v24, %v539_v16 }
 0x10f   :  { %v221_v46 = vadd.f32 %v200_v26, %v162_v15 }
 0x112   :  { %v186_v28 = vpop.xlane.xlu1 %185  ;;  %250 = vperm.xlu1 %775, %v1074_v27  }
 0x113   :  { %v214_v30 = vadd.f32 %v186_v28, %v162_v15 }
 0x115   :  { %785 = vtanh.f32 %v214_v30 }
 0x116   :  { %v188_v31 = vpop.xlane.xlu1 %187 }
 0x117   :  { %v1077_v32 = vpop.eup %783  ;;  %v215_v34 = vadd.f32 %v188_v31, %v162_v15 }
 0x118   :  { %255 = vperm.xlu0 %776, %v1077_v32   ;;  %v543_v26 = vmul.f32 %v1077_v32, %v539_v16 }
 0x119   :  { %787 = vtanh.f32 %v215_v34 }
 0x11a   :  { %v204_v35 = vpop.xlane.xlu1 %203 }
 0x11b   :  { %v223_v51 = vadd.f32 %v204_v35, %v162_v15 }
 0x11e   :  { %v190_v36 = vpop.xlane.xlu1 %189 }
 0x11f   :  { %v1080_v38 = vpop.eup %785  ;;  %v216_v40 = vadd.f32 %v190_v36, %v162_v15 }
 0x120   :  { %260 = vperm.xlu1 %775, %v1080_v38   ;;  %v544_v30 = vmul.f32 %v1080_v38, %v539_v16 }
 0x121   :  { %789 = vtanh.f32 %v216_v40 }
 0x122   :  { %v206_v43 = vpop.xlane.xlu1 %205  ;;  %791 = vtanh.f32 %v219_v42 }
 0x123   :  { %v1083_v44 = vpop.eup %787  ;;  %793 = vtanh.f32 %v221_v46  ;;  %v224_v60 = vadd.f32 %v206_v43, %v162_v15 }
 0x124   :  { %265 = vperm.xlu1 %775, %v1083_v44   ;;  %v545_v31 = vmul.f32 %v1083_v44, %v539_v16 }
 0x126   :  { %v192_v1 = vpop.xlane.xlu1 %191 }
 0x127   :  { %v217_v48 = vadd.f32 %v192_v1, %v162_v15 }
 0x129   :  { %795 = vtanh.f32 %v217_v48 }
 0x12a   :  { %v208_v52 = vpop.xlane.xlu1 %207  ;;  %797 = vtanh.f32 %v220_v50 }
 0x12b   :  { %v790_v54 = vpop.eup %789  ;;  %799 = vtanh.f32 %v223_v51  ;;  %v225_v56 = vadd.f32 %v208_v52, %v162_v15 }
 0x12c   :  { %270 = vperm.xlu0 %776, %v790_v54   ;;  %v792_v59 = vpop.eup %791  ;;  %801 = vtanh.f32 %v222_v55  ;;  %v546_v34 = vmul.f32 %v790_v54, %v539_v16 }
 0x12d   :  { %803 = vtanh.f32 %v225_v56  ;;  %v794_v61 = vpop.eup %793  ;;  %v549_v20 = vmul.f32 %v792_v59, %v539_v16 }
 0x12e   :  { %v194_v58 = vpop.xlane.xlu1 %193  ;;  %805 = vtanh.f32 %v224_v60  ;;  %v551_v23 = vmul.f32 %v794_v61, %v539_v16 }
 0x12f   :  { %v218_v2 = vadd.f32 %v194_v58, %v162_v15 }
 0x130   :  { %285 = vperm.xlu0 %776, %v792_v59  }
 0x132   :  { %v210_v62 = vpop.xlane.xlu1 %209 }
 0x133   :  { %v796_v63 = vpop.eup %795  ;;  %v226_v0 = vadd.f32 %v210_v62, %v162_v15  ;;  %v542_v15 = vmul.f32 %v1074_v27, %v539_v16 }
 0x134   :  { %295 = vperm.xlu0 %776, %v794_v61   ;;  %275 = vperm.xlu1 %775, %v796_v63   ;;  %v798_v4 = vpop.eup %797  ;;  %v547_v36 = vmul.f32 %v796_v63, %v539_v16 }
 0x135   :  { %807 = vtanh.f32 %v226_v0  ;;  %v800_v9 = vpop.eup %799  ;;  %v550_v22 = vmul.f32 %v798_v4, %v539_v16 }
 0x136   :  { %809 = vtanh.f32 %v218_v2  ;;  %v802_v10 = vpop.eup %801  ;;  %v553_v24 = vmul.f32 %v800_v9, %v539_v16 }
 0x137   :  { %v804_v11 = vpop.eup %803  ;;  %v552_v28 = vmul.f32 %v802_v10, %v539_v16 }
 0x138   :  { %305 = vperm.xlu0 %776, %v800_v9   ;;  %290 = vperm.xlu1 %775, %v798_v4   ;;  %v806_v12 = vpop.eup %805  ;;  %v555_v35 = vmul.f32 %v804_v11, %v539_v16 }
 0x139   :  { %v554_v27 = vmul.f32 %v806_v12, %v539_v16 }
 0x13c   :  { %315 = vperm.xlu0 %776, %v804_v11   ;;  %300 = vperm.xlu1 %775, %v802_v10  }
 0x13f   :  { %v808_v14 = vpop.eup %807 }
 0x140   :  { %320 = vperm.xlu0 %776, %v808_v14   ;;  %310 = vperm.xlu1 %775, %v806_v12   ;;  %v810_v19 = vpop.eup %809  ;;  %v556_v40 = vmul.f32 %v808_v14, %v539_v16 }
 0x141   :  { %v548_v32 = vmul.f32 %v810_v19, %v539_v16 }
 0x144   :  { %280 = vperm.xlu1 %775, %v810_v19   ;;  %574 = vperm.xlu0 %776, %v541_v18  }
 0x148   :  { %577 = vperm.xlu1 %775, %v542_v15   ;;  %598 = vperm.xlu0 %776, %v549_v20  }
 0x14c   :  { %601 = vperm.xlu1 %775, %v550_v22   ;;  %604 = vperm.xlu0 %776, %v551_v23  }
 0x150   :  { %580 = vperm.xlu1 %775, %v543_v26   ;;  %607 = vperm.xlu0 %776, %v552_v28  }
 0x154   :  { %583 = vperm.xlu1 %775, %v544_v30   ;;  %610 = vperm.xlu0 %776, %v553_v24  }
 0x158   :  { %586 = vperm.xlu1 %775, %v545_v31   ;;  %613 = vperm.xlu0 %776, %v554_v27  }
 0x15c   :  { %589 = vperm.xlu1 %775, %v546_v34   ;;  %616 = vperm.xlu0 %776, %v555_v35  }
 0x160   :  { %592 = vperm.xlu1 %775, %v547_v36   ;;  %619 = vperm.xlu0 %776, %v556_v40  }
 0x164   :  { %595 = vperm.xlu1 %775, %v548_v32  }
 0x18d   :  { %v1091_v42 = vpop.permute.xlu1 %245 }
 0x18e   :  { %v323_v38 = vmul.f32 %v1091_v42, %v959_v5 }
 0x190   :  { %v339_v43 = vrot.slane %v323_v38, 4 }
 0x191   :  { %v1095_v44 = vpop.permute.xlu1 %250 }
 0x192   :  { %v340_v46 = vadd.f32 %v339_v43, %v323_v38  ;;  %v324_v1 = vmul.f32 %v1095_v44, %v961_v6  ;;  %v444_v32 = vrot.slane %v1095_v44, %v954_v3 }
 0x194   :  { %v341_v48 = vrot.slane %v340_v46, 2  ;;  %v345_v50 = vrot.slane %v324_v1, 4 }
 0x196   :  { %v342_v51 = vadd.f32 %v341_v48, %v340_v46  ;;  %v346_v52 = vadd.f32 %v345_v50, %v324_v1  ;;  %v440_v1 = vrot.slane %v1091_v42, %v954_v3 }
 0x197   :  { %v256_v54 = vpop.permute.xlu0 %255 }
 0x198   :  { %v347_v55 = vrot.slane %v346_v52, 2  ;;  %v325_v56 = vmul.f32 %v256_v54, %v963_v7  ;;  %v343_v58 = vrot.slane %v342_v51, 1  ;;  %v448_v38 = vrot.slane %v256_v54, %v954_v3 }
 0x19a   :  { %v348_v59 = vadd.f32 %v347_v55, %v346_v52  ;;  %v351_v60 = vrot.slane %v325_v56, 4  ;;  %v344_v62 = vadd.f32 %v343_v58, %v342_v51  ;;  %v502_v55 = vsel %vm501_vm0, %v444_v32, %v440_v1 }
 0x19b   :  { %v504_v58 = vsel %vm503_vm1, %v448_v38, %v502_v55 }
 0x19c   :  { %v349_v61 = vrot.slane %v348_v59, 1  ;;  %v352_v5 = vadd.f32 %v351_v60, %v325_v56 }
 0x19e   :  { %v350_v63 = vadd.f32 %v349_v61, %v348_v59  ;;  %v353_v0 = vrot.slane %v352_v5, 2 }
 0x19f   :  { %v261_v2 = vpop.permute.xlu1 %260 }
 0x1a0   :  { %v723_v6 = vsel %vm501_vm0, %v350_v63, %v344_v62  ;;  %v354_v4 = vadd.f32 %v353_v0, %v352_v5  ;;  %v326_v9 = vmul.f32 %v261_v2, %v965_v8  ;;  %v452_v48 = vrot.slane %v261_v2, %v954_v3 }
 0x1a2   :  { %v355_v10 = vrot.slane %v354_v4, 1  ;;  %v357_v11 = vrot.slane %v326_v9, 4  ;;  %v506_v61 = vsel %vm505_vm2, %v452_v48, %v504_v58 }
 0x1a3   :  { %v266_v12 = vpop.permute.xlu1 %265 }
 0x1a4   :  { %v356_v14 = vadd.f32 %v355_v10, %v354_v4  ;;  %v358_v7 = vadd.f32 %v357_v11, %v326_v9  ;;  %v327_v16 = vmul.f32 %v266_v12, %v975_v13  ;;  %v456_v54 = vrot.slane %v266_v12, %v954_v3 }
 0x1a6   :  { %v724_v18 = vsel %vm503_vm1, %v356_v14, %v723_v6  ;;  %v359_v19 = vrot.slane %v358_v7, 2  ;;  %v363_v15 = vrot.slane %v327_v16, 4 }
 0x1a8   :  { %v360_v20 = vadd.f32 %v359_v19, %v358_v7  ;;  %v364_v22 = vadd.f32 %v363_v15, %v327_v16 }
 0x1aa   :  { %v361_v23 = vrot.slane %v360_v20, 1  ;;  %v365_v26 = vrot.slane %v364_v22, 2 }
 0x1ab   :  { %v271_v28 = vpop.permute.xlu0 %270 }
 0x1ac   :  { %v362_v30 = vadd.f32 %v361_v23, %v360_v20  ;;  %v366_v24 = vadd.f32 %v365_v26, %v364_v22  ;;  %v328_v8 = vmul.f32 %v271_v28, %v980_v17  ;;  %v460_v5 = vrot.slane %v271_v28, %v954_v3 }
 0x1ae   :  { %v725_v31 = vsel %vm505_vm2, %v362_v30, %v724_v18  ;;  %v367_v27 = vrot.slane %v366_v24, 1  ;;  %v369_v34 = vrot.slane %v328_v8, 4 }
 0x1af   :  { %v286_v13 = vpop.permute.xlu0 %285 }
 0x1b0   :  { %v368_v35 = vadd.f32 %v367_v27, %v366_v24  ;;  %v370_v36 = vadd.f32 %v369_v34, %v328_v8  ;;  %v331_v40 = vmul.f32 %v286_v13, %v995_v29  ;;  %v472_v12 = vrot.slane %v286_v13, %v954_v3 }
 0x1b2   :  { %v371_v43 = vrot.slane %v370_v36, 2  ;;  %v387_v46 = vrot.slane %v331_v40, 4  ;;  %v726_v17 = vsel %vm507_vm3, %v368_v35, %v725_v31 }
 0x1b3   :  { %v1114_v50 = vpop.permute.xlu1 %275  ;;  %v296_v51 = vpop.permute.xlu0 %295 }
 0x1b4   :  { %v372_v52 = vadd.f32 %v371_v43, %v370_v36  ;;  %v388_v29 = vadd.f32 %v387_v46, %v331_v40  ;;  %v329_v44 = vmul.f32 %v1114_v50, %v985_v21  ;;  %v333_v56 = vmul.f32 %v296_v51, %v1005_v37 }
 0x1b5   :  { %v508_v37 = vsel %vm507_vm3, %v456_v54, %v506_v61  ;;  %v464_v23 = vrot.slane %v1114_v50, %v954_v3  ;;  %v480_v27 = vrot.slane %v296_v51, %v954_v3 }
 0x1b6   :  { %v373_v59 = vrot.slane %v372_v52, 1  ;;  %v389_v42 = vrot.slane %v388_v29, 2  ;;  %v375_v60 = vrot.slane %v329_v44, 4  ;;  %v399_v62 = vrot.slane %v333_v56, 4 }
 0x1b7   :  { %v291_v63 = vpop.permute.xlu1 %290  ;;  %v1124_v0 = vpop.permute.xlu0 %305  ;;  %v1138_v22 = vsel %vm509_vm4, %v460_v5, %v508_v37 }
 0x1b8   :  { %v374_v21 = vadd.f32 %v373_v59, %v372_v52  ;;  %v390_v2 = vadd.f32 %v389_v42, %v388_v29  ;;  %v376_v6 = vadd.f32 %v375_v60, %v329_v44  ;;  %v332_v4 = vmul.f32 %v291_v63, %v1000_v33 }
 0x1b9   :  { %v400_v9 = vadd.f32 %v399_v62, %v333_v56  ;;  %v476_v10 = vrot.slane %v291_v63, %v954_v3  ;;  %v335_v11 = vmul.f32 %v1124_v0, %v1015_v45  ;;  %v488_v38 = vrot.slane %v1124_v0, %v954_v3 }
 0x1ba   :  { %v377_v14 = vrot.slane %v376_v6, 2  ;;  %v393_v7 = vrot.slane %v332_v4, 4  ;;  %v1133_v16 = vsel %vm509_vm4, %v374_v21, %v726_v17  ;;  %v391_v18 = vrot.slane %v390_v2, 1 }
 0x1bb   :  { %v401_v19 = vrot.slane %v400_v9, 2  ;;  %v411_v15 = vrot.slane %v335_v11, 4  ;;  %v301_v20 = vpop.permute.xlu1 %300  ;;  %v1135_v33 = vpop.permute.xlu0 %315  ;;  %v515_v26 = vsel %vm501_vm0, %v476_v10, %v472_v12 }
 0x1bc   :  { %v394_v45 = vadd.f32 %v393_v7, %v332_v4  ;;  %v334_v28 = vmul.f32 %v301_v20, %v1010_v41  ;;  %v378_v30 = vadd.f32 %v377_v14, %v376_v6  ;;  %v484_v31 = vrot.slane %v301_v20, %v954_v3 }
 0x1bd   :  { %v402_v24 = vadd.f32 %v401_v19, %v400_v9  ;;  %v412_v8 = vadd.f32 %v411_v15, %v335_v11  ;;  %v337_v35 = vmul.f32 %v1135_v33, %v1025_v53  ;;  %v392_v36 = vadd.f32 %v391_v18, %v390_v2 }
 0x1be   :  { %v395_v34 = vrot.slane %v394_v45, 2  ;;  %v405_v13 = vrot.slane %v334_v28, 4  ;;  %v516_v1 = vsel %vm503_vm1, %v480_v27, %v515_v26  ;;  %v379_v51 = vrot.slane %v378_v30, 1 }
 0x1bf   :  { %v403_v40 = vrot.slane %v402_v24, 1  ;;  %v413_v32 = vrot.slane %v412_v8, 2  ;;  %v311_v43 = vpop.permute.xlu1 %310  ;;  %v321_v41 = vpop.permute.xlu0 %320  ;;  %v423_v48 = vrot.slane %v337_v35, 4  ;;  %v517_v53 = vsel %vm505_vm2, %v484_v31, %v516_v1 }
 0x1c0   :  { %v396_v46 = vadd.f32 %v395_v34, %v394_v45  ;;  %v406_v17 = vadd.f32 %v405_v13, %v334_v28  ;;  %v336_v29 = vmul.f32 %v311_v43, %v1020_v49  ;;  %v338_v56 = vmul.f32 %v321_v41, %v1030_v57 }
 0x1c1   :  { %v414_v52 = vadd.f32 %v413_v32, %v412_v8  ;;  %v424_v54 = vadd.f32 %v423_v48, %v337_v35  ;;  %v404_v58 = vadd.f32 %v403_v40, %v402_v24  ;;  %v496_v59 = vrot.slane %v1135_v33, %v954_v3 }
 0x1c2   :  { %v397_v44 = vrot.slane %v396_v46, 1  ;;  %v407_v55 = vrot.slane %v406_v17, 2  ;;  %v417_v42 = vrot.slane %v336_v29, 4  ;;  %v492_v60 = vrot.slane %v311_v43, %v954_v3 }
 0x1c3   :  { %v281_v61 = vpop.permute.xlu1 %280  ;;  %v1157_v5 = vpop.permute.xlu0 %574  ;;  %v425_v0 = vrot.slane %v424_v54, 2  ;;  %v429_v21 = vrot.slane %v338_v56, 4  ;;  %v415_v49 = vrot.slane %v414_v52, 1  ;;  %v500_v6 = vrot.slane %v321_v41, %v954_v3 }
 0x1c4   :  { %v398_v62 = vadd.f32 %v397_v44, %v396_v46  ;;  %v408_v63 = vadd.f32 %v407_v55, %v406_v17  ;;  %v418_v2 = vadd.f32 %v417_v42, %v336_v29  ;;  %v330_v57 = vmul.f32 %v281_v61, %v990_v25 }
 0x1c5   :  { %v426_v9 = vadd.f32 %v425_v0, %v424_v54  ;;  %v430_v10 = vadd.f32 %v429_v21, %v338_v56  ;;  %v518_v7 = vsel %vm507_vm3, %v488_v38, %v517_v53  ;;  %v468_v33 = vrot.slane %v281_v61, %v954_v3 }
 0x1c6   :  { %v730_v4 = vsel %vm501_vm0, %v398_v62, %v392_v36  ;;  %v409_v37 = vrot.slane %v408_v63, 1  ;;  %v419_v12 = vrot.slane %v418_v2, 2  ;;  %v381_v14 = vrot.slane %v330_v57, 4 }
 0x1c7   :  { %v731_v11 = vsel %vm503_vm1, %v404_v58, %v730_v4  ;;  %v1164_v18 = vpop.permute.xlu1 %577  ;;  %v599_v19 = vpop.permute.xlu0 %598  ;;  %v431_v20 = vrot.slane %v430_v10, 2  ;;  %v519_v25 = vsel %vm509_vm4, %v492_v60, %v518_v7  ;;  %v380_v45 = vadd.f32 %v379_v51, %v378_v30 }
 0x1c8   :  { %v410_v15 = vadd.f32 %v409_v37, %v408_v63  ;;  %v420_v26 = vadd.f32 %v419_v12, %v418_v2  ;;  %v382_v28 = vadd.f32 %v381_v14, %v330_v57  ;;  %v520_v24 = vsel %vm511_vm6, %v496_v59, %v519_v25 }
 0x1c9   :  { %v427_v31 = vrot.slane %v426_v9, 1  ;;  %v432_v27 = vadd.f32 %v431_v20, %v430_v10  ;;  %v521_v34 = vsel %vm513_vm5, %v500_v6, %v520_v24  ;;  %v512_v30 = vsel %vm511_vm6, %v464_v23, %v1138_v22 }
 0x1ca   :  { %v732_v8 = vsel %vm505_vm2, %v410_v15, %v731_v11  ;;  %v421_v13 = vrot.slane %v420_v26, 1  ;;  %v383_v35 = vrot.slane %v382_v28, 2  ;;  %v528_v36 = vsel %vm524_vm7, %v521_v34, 0.0 }
 0x1cb   :  { %v602_v40 = vpop.permute.xlu1 %601  ;;  %v605_v32 = vpop.permute.xlu0 %604  ;;  %v416_v38 = vadd.f32 %v415_v49, %v414_v52  ;;  %v433_v43 = vrot.slane %v432_v27, 1  ;;  %529 = vadd.xlane.f32.xlu0 %v528_v36  ;;  %v514_v41 = vsel %vm513_vm5, %v468_v33, %v512_v30  ;;  %v428_v48 = vadd.f32 %v427_v31, %v426_v9 }
 0x1cc   :  { %v422_v46 = vadd.f32 %v421_v13, %v420_v26  ;;  %v384_v17 = vadd.f32 %v383_v35, %v382_v28  ;;  %v525_v1 = vsel %vm524_vm7, %v514_v41, 0.0  ;;  %v728_v50 = vsel %vm511_vm6, %v380_v45, %v1133_v16 }
 0x1cd   :  { %526 = vadd.xlane.f32.xlu1 %v525_v1  ;;  %v733_v51 = vsel %vm507_vm3, %v416_v38, %v732_v8  ;;  %v434_v53 = vadd.f32 %v433_v43, %v432_v27  ;;  %v660_v42 = vrot.slane %v602_v40, %v954_v3  ;;  %v656_v16 = vrot.slane %v599_v19, %v954_v3 }
 0x1ce   :  { %v385_v22 = vrot.slane %v384_v17, 1  ;;  %v734_v52 = vsel %vm509_vm4, %v422_v46, %v733_v51  ;;  %v664_v62 = vrot.slane %v605_v32, %v954_v3  ;;  %v628_v6 = vrot.slane %v1164_v18, %v954_v3 }
 0x1cf   :  { %v581_v23 = vpop.permute.xlu1 %580  ;;  %v608_v29 = vpop.permute.xlu0 %607  ;;  %v735_v44 = vsel %vm511_vm6, %v428_v48, %v734_v52  ;;  %v692_v63 = vsel %vm501_vm0, %v660_v42, %v656_v16  ;;  %v624_v10 = vrot.slane %v1157_v5, %v954_v3 }
 0x1d0   :  { %v386_v55 = vadd.f32 %v385_v22, %v384_v17  ;;  %v736_v54 = vsel %vm513_vm5, %v434_v53, %v735_v44  ;;  %v668_v0 = vrot.slane %v608_v29, %v954_v3  ;;  %v693_v4 = vsel %vm503_vm1, %v664_v62, %v692_v63 }
 0x1d1   :  { %v632_v37 = vrot.slane %v581_v23, %v954_v3  ;;  %v685_v15 = vsel %vm501_vm0, %v628_v6, %v624_v10  ;;  %v740_v43 = vmul.f32 %v736_v54, %v1046_v39 }
 0x1d2   :  { %v729_v59 = vsel %vm513_vm5, %v386_v55, %v728_v50  ;;  %v694_v11 = vsel %vm505_vm2, %v668_v0, %v693_v4 }
 0x1d3   :  { %v584_v56 = vpop.permute.xlu1 %583  ;;  %v611_v58 = vpop.permute.xlu0 %610  ;;  %v686_v5 = vsel %vm503_vm1, %v632_v37, %v685_v15 }
 0x1d4   :  { %v672_v21 = vrot.slane %v611_v58, %v954_v3  ;;  %v636_v12 = vrot.slane %v584_v56, %v954_v3 }
 0x1d6   :  { %v695_v14 = vsel %vm507_vm3, %v672_v21, %v694_v11  ;;  %v687_v28 = vsel %vm505_vm2, %v636_v12, %v686_v5 }
 0x1d7   :  { %v587_v60 = vpop.permute.xlu1 %586  ;;  %v614_v61 = vpop.permute.xlu0 %613 }
 0x1d8   :  { %v676_v57 = vrot.slane %v614_v61, %v954_v3  ;;  %v640_v7 = vrot.slane %v587_v60, %v954_v3 }
 0x1da   :  { %v696_v20 = vsel %vm509_vm4, %v676_v57, %v695_v14  ;;  %v688_v8 = vsel %vm507_vm3, %v640_v7, %v687_v28 }
 0x1db   :  { %v590_v49 = vpop.permute.xlu1 %589  ;;  %v617_v2 = vpop.permute.xlu0 %616 }
 0x1dc   :  { %v680_v9 = vrot.slane %v617_v2, %v954_v3  ;;  %v644_v33 = vrot.slane %v590_v49, %v954_v3 }
 0x1de   :  { %v697_v26 = vsel %vm511_vm6, %v680_v9, %v696_v20  ;;  %v689_v34 = vsel %vm509_vm4, %v644_v33, %v688_v8 }
 0x1df   :  { %v593_v18 = vpop.permute.xlu1 %592  ;;  %v620_v19 = vpop.permute.xlu0 %619 }
 0x1e0   :  { %v684_v25 = vrot.slane %v620_v19, %v954_v3  ;;  %v648_v45 = vrot.slane %v593_v18, %v954_v3 }
 0x1e2   :  { %v698_v24 = vsel %vm513_vm5, %v684_v25, %v697_v26  ;;  %v690_v35 = vsel %vm511_vm6, %v648_v45, %v689_v34 }
 0x1e3   :  { %v596_v31 = vpop.permute.xlu1 %595  ;;  %v704_v27 = vsel %vm524_vm7, %v698_v24, 0.0 }
 0x1e4   :  { %v652_v13 = vrot.slane %v596_v31, %v954_v3  ;;  %705 = vadd.xlane.f32.xlu1 %v704_v27  ;;  %v739_v3 = vmul.f32 %v729_v59, %v1046_v39 }
 0x1e6   :  { %v691_v36 = vsel %vm513_vm5, %v652_v13, %v690_v35 }
 0x1e7   :  { %v701_v30 = vsel %vm524_vm7, %v691_v36, 0.0 }
 0x1e8   :  { %702 = vadd.xlane.f32.xlu0 %v701_v30 }
 0x258   :  { %v530_v40 = vpop.xlane.xlu0 %529 }
 0x259   :  { %v742_v32 = vmul.f32 %v530_v40, %v1051_v47 }
 0x25a   :  { %v527_v38 = vpop.xlane.xlu1 %526 }
 0x25b   :  { %v741_v41 = vmul.f32 %v527_v38, %v1051_v47  ;;  %v744_v46 = vadd.f32 %v742_v32, %v740_v43 }
 0x25d   :  { %v743_v48 = vadd.f32 %v741_v41, %v739_v3 }
 0x271   :  { %v706_v17 = vpop.xlane.xlu1 %705 }
 0x272   :  { %v746_v1 = vadd.f32 %v744_v46, %v706_v17 }
 0x274   :  { %748 = vst [vmem:[#allocation7 + $0x8] sm:$0xff] %v746_v1 }
 0x275   :  { %v703_v51 = vpop.xlane.xlu0 %702 }
 0x276   :  { %v745_v50 = vadd.f32 %v743_v48, %v703_v51 }
 0x278   :  { %747 = vst [vmem:[#allocation7] sm:$0xff] %v745_v50 }
 0x279   :  { %866 = shalt.err (!%p863_p6)
}
 0x27a   :  { %s867_s30 = scalar_lea.hbm %s1245_s6, 256 }
 0x27b   :  { %p868_p7 = scmp.ne.s32.totalorder %s1245_s6, %s867_s30  ;;  %p871_p8 = scmp.lt.u32.totalorder %s867_s30, %s1245_s6 }
 0x27d   :  { %p873_p9 = pnand %p871_p8, %p868_p7 }
 0x27f   :  { %876 = shalt.err (!%p873_p9)
}
 0x280   :  { %760 = dma.vmem_to_hbm [thread:$0]  %s755_s26, 256, %s1245_s6, [#allocation4], %s884_s7, %s884_s7, %s885_s8  }
 0x281   :  { %881 = dma.done.wait [#allocation4], 256  }
 0x282   :  { %882 = vsyncadd [#allocation4], 4294967040 }
 0x283   :  { %764 = vsyncpa [#allocation3], 1 }
 0x284   :  { %765 = vsyncpa [#allocation6], 1 }
 0x285   :  { %766 = vsyncpa [#allocation4], 1 }

</bundles_post_ra>
